<compile_context>
chip_gen: v5e
topology: v5e:2x2
jax: 0.10.0
libtpu: 0.0.40
codegen_flags: <defaults>
</compile_context>

<pallas_src>
import functools

import jax
import jax.numpy as jnp
from jax import lax
from jax.experimental import pallas as pl
from jax.experimental.pallas import tpu as pltpu


# ---------------------------------------------------------------------------
# Chip-aware sizing helpers.
# ---------------------------------------------------------------------------

def _vmem_capacity_bytes() -> int:
    try:
        info = pltpu.get_tpu_info()
        for name in ("vmem_capacity_bytes", "vmem_size_bytes", "vmem_bytes"):
            val = getattr(info, name, None)
            if val:
                return int(val)
    except Exception:
        pass
    return 128 * 1024 * 1024          # v5e / v6e default


def _block_budget_bytes(vmem_capacity: int) -> int:
    # 2x input + 2x output double-buffers plus per-stripe intermediates must fit.
    if vmem_capacity <= 64 * 1024 * 1024:      # v7x-class: 64 MiB physical VMEM
        return 5 * 1024 * 1024
    return 8 * 1024 * 1024                     # v5e / v6e: 128 MiB physical VMEM


def _pick_rows_per_step(*, n_h, n_w, p_h, H, n_patches, bytes_per_row, budget):
    """Patch-rows per grid step: largest block within the chip-aware budget,
    subject to >=4 grid steps when nH permits (prefer an even step count) and
    to block-shape alignment: (R*p_h, W) and (R*n_w, LW) must be (8, *)-aligned
    or equal to the full array extents."""

    def valid(R):
        if (R * p_h) % 8 != 0 and R * p_h != H:
            return False
        if (R * n_w) % 8 != 0 and R * n_w != n_patches:
            return False
        if (p_h % 8 != 0 or n_w % 8 != 0) and R > 8 and R != n_h:
            return False   # kernel uses a static unroll in this case: keep it short
        return True

    divisors = [R for R in range(1, n_h + 1) if n_h % R == 0 and valid(R)]
    # R == n_h (full extent) is always valid, so `divisors` is never empty.
    block = lambda R: R * bytes_per_row
    fitting = [R for R in divisors if block(R) <= budget] or [min(divisors)]

    def score(R):
        steps = n_h // R
        return (steps >= 4, steps % 2 == 0, block(R))

    return max(fitting, key=score)


# ---------------------------------------------------------------------------
# Fast path kernel: lane-dense 2-D output, per-stripe vectorized rearrangement.
# ---------------------------------------------------------------------------

def _patch_rows_kernel(x_ref, o_ref, *, n_w, p_h, p_w, rows):
    """x_ref: (C, rows*p_h, W) -> o_ref: (rows*n_w, C*p_h*p_w).

    out[r*n_w + w, (c*p_h + i)*p_w + j] = x[c, r*p_h + i, w*p_w + j]
    """
    C = x_ref.shape[0]
    W = x_ref.shape[2]
    M = C * p_h                  # rows of the per-stripe 2-D view ( = (c, i) )
    LW = M * p_w                 # output lane width per patch

    def stripe_to_rows(stripe):
        # (C, p_h, W) -> (n_w, LW) with lane order (c, i, j).
        xm = stripe.reshape(M, W)                          # free major merge
        xt = xm.T                                          # relayout 1 (input lanes W: wide)
        xw = jnp.swapaxes(xt.reshape(n_w, p_w, M), 1, 2)   # relayout 2 -> (n_w, M, p_w)
        # Lane regroup (m, j) -> m*p_w + j, assembled in vregs and written back
        # with ONE wide (unmasked when LW % 128 == 0) store per stripe instead
        # of M narrow masked stores or a sublane-padded 3-D grouped output.
        return jnp.concatenate([xw[:, m, :] for m in range(M)], axis=-1)

    if rows == 1:
        o_ref[...] = stripe_to_rows(x_ref[...])
        return

    if p_h % 8 == 0 and n_w % 8 == 0:
        # Dynamic offsets stay sublane aligned: keep this a real loop so live
        # ranges are bounded (no vreg-spill blowup at large `rows`).
        def body(r, carry):
            h0 = pl.multiple_of(r * p_h, p_h)
            rows_r = stripe_to_rows(x_ref[:, pl.ds(h0, p_h), :])
            r0 = pl.multiple_of(r * n_w, n_w)
            o_ref[pl.ds(r0, n_w), :] = rows_r
            return carry

        lax.fori_loop(0, rows, body, 0)
    else:
        # Tiny / oddly shaped images: short static unroll with static slices.
        for r in range(rows):
            o_ref[r * n_w:(r + 1) * n_w, :] = stripe_to_rows(
                x_ref[:, r * p_h:(r + 1) * p_h, :])


def _patch_transform_fast(img: jax.Array, patch_size: int, pack: int) -> jax.Array:
    C, H, W = img.shape
    P = patch_size
    nH, nW = H // P, W // P
    n_patches = nH * nW
    p_h, p_w = P, P // pack
    W_work = W // pack

    if pack > 1:
        # Pack `pack` adjacent pixels along W into one 32-bit lane element so the
        # kernel always moves 32-bit data (widest transpose/store support).  The
        # packed pixels stay adjacent (and ordered) in the output, so unpacking
        # is a metadata-only bitcast + reshape.
        # TODO(synk): move the packing in-kernel with pltpu.bitcast if XLA ever
        # materializes this bitcast as an extra HBM pass.
        work = jax.lax.bitcast_convert_type(
            img.reshape(C, H, W_work, pack), jnp.uint32)
    else:
        work = img

    M = C * p_h
    LW = M * p_w
    bytes_per_row = C * p_h * W_work * 4       # one patch-row worth of a block

    vmem_cap = _vmem_capacity_bytes()
    budget = _block_budget_bytes(vmem_cap)
    R = _pick_rows_per_step(n_h=nH, n_w=nW, p_h=p_h, H=H, n_patches=n_patches,
                            bytes_per_row=bytes_per_row, budget=budget)
    block_bytes = R * bytes_per_row
    # 2x double-buffered input block + 2x output block (same size) + a few
    # per-stripe intermediates + slack, clamped to what the chip actually has.
    need = 4 * block_bytes + 4 * (block_bytes // R) + (8 << 20)
    vmem_limit = int(max(32 << 20, min(need, int(vmem_cap * 0.85))))

    kernel = functools.partial(_patch_rows_kernel, n_w=nW, p_h=p_h, p_w=p_w,
                               rows=R)
    out2d = pl.pallas_call(
        kernel,
        out_shape=jax.ShapeDtypeStruct((n_patches, LW), work.dtype),
        grid=(nH // R,),
        in_specs=[
            # R patch-row stripes; last dim = full W (lane-dense input DMA).
            pl.BlockSpec((C, R * p_h, W_work), lambda h: (0, h, 0)),
        ],
        # 2-D lane- and sublane-dense output block (no (G, L) sublane padding).
        out_specs=pl.BlockSpec((R * nW, LW), lambda h: (h, 0)),
        compiler_params=pltpu.CompilerParams(
            dimension_semantics=("parallel",),
            vmem_limit_bytes=vmem_limit),
        # Pure copy: tell XLA's scheduler there is no math, only HBM traffic.
        cost_estimate=pl.CostEstimate(
            flops=0, transcendentals=0,
            bytes_accessed=2 * C * H * W * img.dtype.itemsize),
    )(work)
    # TODO(synk): sweep pipeline_mode=pl.Buffered(3) on the input spec if xprof
    # ever shows exposed DMA at small step counts.

    if pack > 1:
        out2d = jax.lax.bitcast_convert_type(out2d, img.dtype)  # (n_patches, LW, pack)
    # Metadata-only regroup back to the PyTorch output shape.
    return out2d.reshape(n_patches, C, P, P)


# ---------------------------------------------------------------------------
# Fallback path: simple tiled copy kernel (any P / dtype the fast path skips).
# ---------------------------------------------------------------------------

def _patch_copy_kernel(x_ref, o_ref, *, n_w, patch, rows):
    P = patch
    for r in range(rows):
        for w in range(n_w):
            o_ref[r * n_w + w] = x_ref[:, r * P:(r + 1) * P, w * P:(w + 1) * P]


def _patch_transform_fallback(img: jax.Array, patch_size: int) -> jax.Array:
    """Tiled (per patch-row-group) copy kernel; never holds the whole image in VMEM."""
    C, H, W = img.shape
    P = patch_size
    nH, nW = H // P, W // P
    # Smallest patch-row group whose height is sublane aligned (else everything).
    R = next((r for r in range(1, nH + 1)
              if nH % r == 0 and (r * P) % 8 == 0), nH)
    # TODO(synk): very wide images on this path pay a large static unroll (nW
    # slices per row group); acceptable for the rare odd-P / odd-dtype cases.
    kernel = functools.partial(_patch_copy_kernel, n_w=nW, patch=P, rows=R)
    return pl.pallas_call(
        kernel,
        out_shape=jax.ShapeDtypeStruct((nH * nW, C, P, P), img.dtype),
        grid=(nH // R,),
        in_specs=[pl.BlockSpec((C, R * P, W), lambda h: (0, h, 0))],
        out_specs=pl.BlockSpec((R * nW, C, P, P), lambda h: (h, 0, 0, 0)),
        compiler_params=pltpu.CompilerParams(
            dimension_semantics=("parallel",)),
    )(img)


# ---------------------------------------------------------------------------
# Public wrapper.
# ---------------------------------------------------------------------------

_FALLBACK_ERRORS = tuple(
    e for e in (getattr(pltpu, "LoweringException", None),
                NotImplementedError,
                getattr(jax.errors, "JaxRuntimeError", None))
    if e is not None)


def patch_transform(img: jax.Array, patch_size: int) -> jax.Array:
    """Pallas implementation of PatchTransform.forward."""
    C, H, W = img.shape
    P = patch_size
    assert H % P == 0 and W % P == 0, "H and W must be divisible by patch_size"

    itemsize = img.dtype.itemsize
    pack = 1 if itemsize == 4 else (4 // itemsize if itemsize in (1, 2) else 0)
    use_fast = (
        pack > 0
        and P % pack == 0             # sub-32-bit dtypes pack `pack` pixels along W
        and (P % 8 == 0 or H == P)    # sublane-aligned stripes (or a single stripe)
        and C * P <= 512              # keep the lane-regroup piece count bounded
    )
    if use_fast:
        try:
            return _patch_transform_fast(img, P, pack)
        except _FALLBACK_ERRORS as e:   # narrowed per review; logged, not silent
            print("patch_transform: fast path failed to lower "
                  f"({type(e).__name__}); using tiled fallback kernel.")
    return _patch_transform_fallback(img, P)


def patch_transform_ref(img: jax.Array, patch_size: int) -> jax.Array:
    """Pure-JAX reference mirroring the PyTorch module."""
    C, H, W = img.shape
    P = patch_size
    nH, nW = H // P, W // P
    x = img.reshape(C, nH, P, nW, P)
    x = jnp.transpose(x, (1, 3, 0, 2, 4))          # (nH, nW, C, P, P)
    return x.reshape(nH * nW, C, P, P)


if __name__ == "__main__":
    key = jax.random.PRNGKey(0)

    # (C, H, W, patch_size, dtype):
    #   f32 fast path; packed-bf16 fast path; larger patch / odd channel count;
    #   multi-step grid exercising the aligned fori_loop path.
    configs = [
        (4, 16, 16, 8, jnp.float32),
        (4, 16, 16, 8, jnp.bfloat16),
        (3, 32, 32, 16, jnp.float32),
        (4, 64, 64, 8, jnp.float32),
    ]
    for idx, (C, H, W, P, dtype) in enumerate(configs):
        k = jax.random.fold_in(key, idx)
        img = jax.random.normal(k, (C, H, W), dtype=jnp.float32).astype(dtype)
        out = jax.block_until_ready(patch_transform(img, P))
        ref = patch_transform_ref(img, P)
        n_patches = (H // P) * (W // P)
        assert out.shape == (n_patches, C, P, P), out.shape
        assert out.dtype == img.dtype
        assert jnp.array_equal(out, ref), f"mismatch for config {(C, H, W, P)}"

    # Also exercise the tiled fallback kernel (used for odd P / odd dtypes).
    img = jax.random.normal(key, (3, 16, 16), dtype=jnp.float32)
    out = jax.block_until_ready(_patch_transform_fallback(img, 8))
    assert jnp.array_equal(out, patch_transform_ref(img, 8))

    print("KERNEL_OK")
</pallas_src>

<mosaic_0001>
module attributes {stable_mosaic.version = 11 : i64} {
  func.func @_patch_rows_kernel(%arg0: i32, %arg1: memref<4x16x16xf32, #tpu.memory_space<vmem>>, %arg2: memref<4x256xf32, #tpu.memory_space<vmem>>) attributes {dimension_semantics = [#tpu.dimension_semantics<parallel>], iteration_bounds = array<i64: 1>, scalar_prefetch = 0 : i64, scratch_operands = 0 : i64, tpu.core_type = #tpu.core_type<tc>, window_params = [{transform_indices = @transform_0, window_bounds = array<i64: 4, 16, 16>}, {transform_indices = @transform_1, window_bounds = array<i64: 4, 256>}]} {
    %c0 = arith.constant 0 : index
    %c0_0 = arith.constant 0 : index
    %c0_1 = arith.constant 0 : index
    %0 = vector.load %arg1[%c0, %c0_0, %c0_1] : memref<4x16x16xf32, #tpu.memory_space<vmem>>, vector<4x8x16xf32>
    %1 = vector.shape_cast %0 : vector<4x8x16xf32> to vector<32x16xf32>
    %2 = tpu.transpose %1, [1, 0] : vector<32x16xf32> -> vector<16x32xf32>
    %3 = vector.shape_cast %2 : vector<16x32xf32> to vector<2x8x32xf32>
    %4 = tpu.transpose %3, [0, 2, 1] : vector<2x8x32xf32> -> vector<2x32x8xf32>
    %5 = vector.extract_strided_slice %4 {offsets = [0, 0, 0], sizes = [2, 1, 8], strides = [1, 1, 1]} : vector<2x32x8xf32> to vector<2x1x8xf32>
    %6 = vector.shape_cast %5 : vector<2x1x8xf32> to vector<2x8xf32>
    %7 = vector.extract_strided_slice %4 {offsets = [0, 1, 0], sizes = [2, 1, 8], strides = [1, 1, 1]} : vector<2x32x8xf32> to vector<2x1x8xf32>
    %8 = vector.shape_cast %7 : vector<2x1x8xf32> to vector<2x8xf32>
    %9 = vector.extract_strided_slice %4 {offsets = [0, 2, 0], sizes = [2, 1, 8], strides = [1, 1, 1]} : vector<2x32x8xf32> to vector<2x1x8xf32>
    %10 = vector.shape_cast %9 : vector<2x1x8xf32> to vector<2x8xf32>
    %11 = vector.extract_strided_slice %4 {offsets = [0, 3, 0], sizes = [2, 1, 8], strides = [1, 1, 1]} : vector<2x32x8xf32> to vector<2x1x8xf32>
    %12 = vector.shape_cast %11 : vector<2x1x8xf32> to vector<2x8xf32>
    %13 = vector.extract_strided_slice %4 {offsets = [0, 4, 0], sizes = [2, 1, 8], strides = [1, 1, 1]} : vector<2x32x8xf32> to vector<2x1x8xf32>
    %14 = vector.shape_cast %13 : vector<2x1x8xf32> to vector<2x8xf32>
    %15 = vector.extract_strided_slice %4 {offsets = [0, 5, 0], sizes = [2, 1, 8], strides = [1, 1, 1]} : vector<2x32x8xf32> to vector<2x1x8xf32>
    %16 = vector.shape_cast %15 : vector<2x1x8xf32> to vector<2x8xf32>
    %17 = vector.extract_strided_slice %4 {offsets = [0, 6, 0], sizes = [2, 1, 8], strides = [1, 1, 1]} : vector<2x32x8xf32> to vector<2x1x8xf32>
    %18 = vector.shape_cast %17 : vector<2x1x8xf32> to vector<2x8xf32>
    %19 = vector.extract_strided_slice %4 {offsets = [0, 7, 0], sizes = [2, 1, 8], strides = [1, 1, 1]} : vector<2x32x8xf32> to vector<2x1x8xf32>
    %20 = vector.shape_cast %19 : vector<2x1x8xf32> to vector<2x8xf32>
    %21 = vector.extract_strided_slice %4 {offsets = [0, 8, 0], sizes = [2, 1, 8], strides = [1, 1, 1]} : vector<2x32x8xf32> to vector<2x1x8xf32>
    %22 = vector.shape_cast %21 : vector<2x1x8xf32> to vector<2x8xf32>
    %23 = vector.extract_strided_slice %4 {offsets = [0, 9, 0], sizes = [2, 1, 8], strides = [1, 1, 1]} : vector<2x32x8xf32> to vector<2x1x8xf32>
    %24 = vector.shape_cast %23 : vector<2x1x8xf32> to vector<2x8xf32>
    %25 = vector.extract_strided_slice %4 {offsets = [0, 10, 0], sizes = [2, 1, 8], strides = [1, 1, 1]} : vector<2x32x8xf32> to vector<2x1x8xf32>
    %26 = vector.shape_cast %25 : vector<2x1x8xf32> to vector<2x8xf32>
    %27 = vector.extract_strided_slice %4 {offsets = [0, 11, 0], sizes = [2, 1, 8], strides = [1, 1, 1]} : vector<2x32x8xf32> to vector<2x1x8xf32>
    %28 = vector.shape_cast %27 : vector<2x1x8xf32> to vector<2x8xf32>
    %29 = vector.extract_strided_slice %4 {offsets = [0, 12, 0], sizes = [2, 1, 8], strides = [1, 1, 1]} : vector<2x32x8xf32> to vector<2x1x8xf32>
    %30 = vector.shape_cast %29 : vector<2x1x8xf32> to vector<2x8xf32>
    %31 = vector.extract_strided_slice %4 {offsets = [0, 13, 0], sizes = [2, 1, 8], strides = [1, 1, 1]} : vector<2x32x8xf32> to vector<2x1x8xf32>
    %32 = vector.shape_cast %31 : vector<2x1x8xf32> to vector<2x8xf32>
    %33 = vector.extract_strided_slice %4 {offsets = [0, 14, 0], sizes = [2, 1, 8], strides = [1, 1, 1]} : vector<2x32x8xf32> to vector<2x1x8xf32>
    %34 = vector.shape_cast %33 : vector<2x1x8xf32> to vector<2x8xf32>
    %35 = vector.extract_strided_slice %4 {offsets = [0, 15, 0], sizes = [2, 1, 8], strides = [1, 1, 1]} : vector<2x32x8xf32> to vector<2x1x8xf32>
    %36 = vector.shape_cast %35 : vector<2x1x8xf32> to vector<2x8xf32>
    %37 = vector.extract_strided_slice %4 {offsets = [0, 16, 0], sizes = [2, 1, 8], strides = [1, 1, 1]} : vector<2x32x8xf32> to vector<2x1x8xf32>
    %38 = vector.shape_cast %37 : vector<2x1x8xf32> to vector<2x8xf32>
    %39 = vector.extract_strided_slice %4 {offsets = [0, 17, 0], sizes = [2, 1, 8], strides = [1, 1, 1]} : vector<2x32x8xf32> to vector<2x1x8xf32>
    %40 = vector.shape_cast %39 : vector<2x1x8xf32> to vector<2x8xf32>
    %41 = vector.extract_strided_slice %4 {offsets = [0, 18, 0], sizes = [2, 1, 8], strides = [1, 1, 1]} : vector<2x32x8xf32> to vector<2x1x8xf32>
    %42 = vector.shape_cast %41 : vector<2x1x8xf32> to vector<2x8xf32>
    %43 = vector.extract_strided_slice %4 {offsets = [0, 19, 0], sizes = [2, 1, 8], strides = [1, 1, 1]} : vector<2x32x8xf32> to vector<2x1x8xf32>
    %44 = vector.shape_cast %43 : vector<2x1x8xf32> to vector<2x8xf32>
    %45 = vector.extract_strided_slice %4 {offsets = [0, 20, 0], sizes = [2, 1, 8], strides = [1, 1, 1]} : vector<2x32x8xf32> to vector<2x1x8xf32>
    %46 = vector.shape_cast %45 : vector<2x1x8xf32> to vector<2x8xf32>
    %47 = vector.extract_strided_slice %4 {offsets = [0, 21, 0], sizes = [2, 1, 8], strides = [1, 1, 1]} : vector<2x32x8xf32> to vector<2x1x8xf32>
    %48 = vector.shape_cast %47 : vector<2x1x8xf32> to vector<2x8xf32>
    %49 = vector.extract_strided_slice %4 {offsets = [0, 22, 0], sizes = [2, 1, 8], strides = [1, 1, 1]} : vector<2x32x8xf32> to vector<2x1x8xf32>
    %50 = vector.shape_cast %49 : vector<2x1x8xf32> to vector<2x8xf32>
    %51 = vector.extract_strided_slice %4 {offsets = [0, 23, 0], sizes = [2, 1, 8], strides = [1, 1, 1]} : vector<2x32x8xf32> to vector<2x1x8xf32>
    %52 = vector.shape_cast %51 : vector<2x1x8xf32> to vector<2x8xf32>
    %53 = vector.extract_strided_slice %4 {offsets = [0, 24, 0], sizes = [2, 1, 8], strides = [1, 1, 1]} : vector<2x32x8xf32> to vector<2x1x8xf32>
    %54 = vector.shape_cast %53 : vector<2x1x8xf32> to vector<2x8xf32>
    %55 = vector.extract_strided_slice %4 {offsets = [0, 25, 0], sizes = [2, 1, 8], strides = [1, 1, 1]} : vector<2x32x8xf32> to vector<2x1x8xf32>
    %56 = vector.shape_cast %55 : vector<2x1x8xf32> to vector<2x8xf32>
    %57 = vector.extract_strided_slice %4 {offsets = [0, 26, 0], sizes = [2, 1, 8], strides = [1, 1, 1]} : vector<2x32x8xf32> to vector<2x1x8xf32>
    %58 = vector.shape_cast %57 : vector<2x1x8xf32> to vector<2x8xf32>
    %59 = vector.extract_strided_slice %4 {offsets = [0, 27, 0], sizes = [2, 1, 8], strides = [1, 1, 1]} : vector<2x32x8xf32> to vector<2x1x8xf32>
    %60 = vector.shape_cast %59 : vector<2x1x8xf32> to vector<2x8xf32>
    %61 = vector.extract_strided_slice %4 {offsets = [0, 28, 0], sizes = [2, 1, 8], strides = [1, 1, 1]} : vector<2x32x8xf32> to vector<2x1x8xf32>
    %62 = vector.shape_cast %61 : vector<2x1x8xf32> to vector<2x8xf32>
    %63 = vector.extract_strided_slice %4 {offsets = [0, 29, 0], sizes = [2, 1, 8], strides = [1, 1, 1]} : vector<2x32x8xf32> to vector<2x1x8xf32>
    %64 = vector.shape_cast %63 : vector<2x1x8xf32> to vector<2x8xf32>
    %65 = vector.extract_strided_slice %4 {offsets = [0, 30, 0], sizes = [2, 1, 8], strides = [1, 1, 1]} : vector<2x32x8xf32> to vector<2x1x8xf32>
    %66 = vector.shape_cast %65 : vector<2x1x8xf32> to vector<2x8xf32>
    %67 = vector.extract_strided_slice %4 {offsets = [0, 31, 0], sizes = [2, 1, 8], strides = [1, 1, 1]} : vector<2x32x8xf32> to vector<2x1x8xf32>
    %68 = vector.shape_cast %67 : vector<2x1x8xf32> to vector<2x8xf32>
    %69 = tpu.concatenate %6, %8, %10, %12, %14, %16, %18, %20, %22, %24, %26, %28, %30, %32, %34, %36 in 1 : vector<2x8xf32>, vector<2x8xf32>, vector<2x8xf32>, vector<2x8xf32>, vector<2x8xf32>, vector<2x8xf32>, vector<2x8xf32>, vector<2x8xf32>, vector<2x8xf32>, vector<2x8xf32>, vector<2x8xf32>, vector<2x8xf32>, vector<2x8xf32>, vector<2x8xf32>, vector<2x8xf32>, vector<2x8xf32> -> vector<2x128xf32>
    %70 = tpu.concatenate %38, %40, %42, %44, %46, %48, %50, %52, %54, %56, %58, %60, %62, %64, %66, %68 in 1 : vector<2x8xf32>, vector<2x8xf32>, vector<2x8xf32>, vector<2x8xf32>, vector<2x8xf32>, vector<2x8xf32>, vector<2x8xf32>, vector<2x8xf32>, vector<2x8xf32>, vector<2x8xf32>, vector<2x8xf32>, vector<2x8xf32>, vector<2x8xf32>, vector<2x8xf32>, vector<2x8xf32>, vector<2x8xf32> -> vector<2x128xf32>
    %71 = tpu.concatenate %69, %70 in 1 : vector<2x128xf32>, vector<2x128xf32> -> vector<2x256xf32>
    %c0_2 = arith.constant 0 : index
    %c0_3 = arith.constant 0 : index
    %72 = vector.load %arg2[%c0_2, %c0_3] : memref<4x256xf32, #tpu.memory_space<vmem>>, vector<2x256xf32>
    tpu.vector_store %arg2[%c0_2, %c0_3], %71 {strides = array<i32>} : memref<4x256xf32, #tpu.memory_space<vmem>>, vector<2x256xf32>,
    %c0_4 = arith.constant 0 : index
    %c8 = arith.constant 8 : index
    %c0_5 = arith.constant 0 : index
    %73 = vector.load %arg1[%c0_4, %c8, %c0_5] : memref<4x16x16xf32, #tpu.memory_space<vmem>>, vector<4x8x16xf32>
    %74 = vector.shape_cast %73 : vector<4x8x16xf32> to vector<32x16xf32>
    %75 = tpu.transpose %74, [1, 0] : vector<32x16xf32> -> vector<16x32xf32>
    %76 = vector.shape_cast %75 : vector<16x32xf32> to vector<2x8x32xf32>
    %77 = tpu.transpose %76, [0, 2, 1] : vector<2x8x32xf32> -> vector<2x32x8xf32>
    %78 = vector.extract_strided_slice %77 {offsets = [0, 0, 0], sizes = [2, 1, 8], strides = [1, 1, 1]} : vector<2x32x8xf32> to vector<2x1x8xf32>
    %79 = vector.shape_cast %78 : vector<2x1x8xf32> to vector<2x8xf32>
    %80 = vector.extract_strided_slice %77 {offsets = [0, 1, 0], sizes = [2, 1, 8], strides = [1, 1, 1]} : vector<2x32x8xf32> to vector<2x1x8xf32>
    %81 = vector.shape_cast %80 : vector<2x1x8xf32> to vector<2x8xf32>
    %82 = vector.extract_strided_slice %77 {offsets = [0, 2, 0], sizes = [2, 1, 8], strides = [1, 1, 1]} : vector<2x32x8xf32> to vector<2x1x8xf32>
    %83 = vector.shape_cast %82 : vector<2x1x8xf32> to vector<2x8xf32>
    %84 = vector.extract_strided_slice %77 {offsets = [0, 3, 0], sizes = [2, 1, 8], strides = [1, 1, 1]} : vector<2x32x8xf32> to vector<2x1x8xf32>
    %85 = vector.shape_cast %84 : vector<2x1x8xf32> to vector<2x8xf32>
    %86 = vector.extract_strided_slice %77 {offsets = [0, 4, 0], sizes = [2, 1, 8], strides = [1, 1, 1]} : vector<2x32x8xf32> to vector<2x1x8xf32>
    %87 = vector.shape_cast %86 : vector<2x1x8xf32> to vector<2x8xf32>
    %88 = vector.extract_strided_slice %77 {offsets = [0, 5, 0], sizes = [2, 1, 8], strides = [1, 1, 1]} : vector<2x32x8xf32> to vector<2x1x8xf32>
    %89 = vector.shape_cast %88 : vector<2x1x8xf32> to vector<2x8xf32>
    %90 = vector.extract_strided_slice %77 {offsets = [0, 6, 0], sizes = [2, 1, 8], strides = [1, 1, 1]} : vector<2x32x8xf32> to vector<2x1x8xf32>
    %91 = vector.shape_cast %90 : vector<2x1x8xf32> to vector<2x8xf32>
    %92 = vector.extract_strided_slice %77 {offsets = [0, 7, 0], sizes = [2, 1, 8], strides = [1, 1, 1]} : vector<2x32x8xf32> to vector<2x1x8xf32>
    %93 = vector.shape_cast %92 : vector<2x1x8xf32> to vector<2x8xf32>
    %94 = vector.extract_strided_slice %77 {offsets = [0, 8, 0], sizes = [2, 1, 8], strides = [1, 1, 1]} : vector<2x32x8xf32> to vector<2x1x8xf32>
    %95 = vector.shape_cast %94 : vector<2x1x8xf32> to vector<2x8xf32>
    %96 = vector.extract_strided_slice %77 {offsets = [0, 9, 0], sizes = [2, 1, 8], strides = [1, 1, 1]} : vector<2x32x8xf32> to vector<2x1x8xf32>
    %97 = vector.shape_cast %96 : vector<2x1x8xf32> to vector<2x8xf32>
    %98 = vector.extract_strided_slice %77 {offsets = [0, 10, 0], sizes = [2, 1, 8], strides = [1, 1, 1]} : vector<2x32x8xf32> to vector<2x1x8xf32>
    %99 = vector.shape_cast %98 : vector<2x1x8xf32> to vector<2x8xf32>
    %100 = vector.extract_strided_slice %77 {offsets = [0, 11, 0], sizes = [2, 1, 8], strides = [1, 1, 1]} : vector<2x32x8xf32> to vector<2x1x8xf32>
    %101 = vector.shape_cast %100 : vector<2x1x8xf32> to vector<2x8xf32>
    %102 = vector.extract_strided_slice %77 {offsets = [0, 12, 0], sizes = [2, 1, 8], strides = [1, 1, 1]} : vector<2x32x8xf32> to vector<2x1x8xf32>
    %103 = vector.shape_cast %102 : vector<2x1x8xf32> to vector<2x8xf32>
    %104 = vector.extract_strided_slice %77 {offsets = [0, 13, 0], sizes = [2, 1, 8], strides = [1, 1, 1]} : vector<2x32x8xf32> to vector<2x1x8xf32>
    %105 = vector.shape_cast %104 : vector<2x1x8xf32> to vector<2x8xf32>
    %106 = vector.extract_strided_slice %77 {offsets = [0, 14, 0], sizes = [2, 1, 8], strides = [1, 1, 1]} : vector<2x32x8xf32> to vector<2x1x8xf32>
    %107 = vector.shape_cast %106 : vector<2x1x8xf32> to vector<2x8xf32>
    %108 = vector.extract_strided_slice %77 {offsets = [0, 15, 0], sizes = [2, 1, 8], strides = [1, 1, 1]} : vector<2x32x8xf32> to vector<2x1x8xf32>
    %109 = vector.shape_cast %108 : vector<2x1x8xf32> to vector<2x8xf32>
    %110 = vector.extract_strided_slice %77 {offsets = [0, 16, 0], sizes = [2, 1, 8], strides = [1, 1, 1]} : vector<2x32x8xf32> to vector<2x1x8xf32>
    %111 = vector.shape_cast %110 : vector<2x1x8xf32> to vector<2x8xf32>
    %112 = vector.extract_strided_slice %77 {offsets = [0, 17, 0], sizes = [2, 1, 8], strides = [1, 1, 1]} : vector<2x32x8xf32> to vector<2x1x8xf32>
    %113 = vector.shape_cast %112 : vector<2x1x8xf32> to vector<2x8xf32>
    %114 = vector.extract_strided_slice %77 {offsets = [0, 18, 0], sizes = [2, 1, 8], strides = [1, 1, 1]} : vector<2x32x8xf32> to vector<2x1x8xf32>
    %115 = vector.shape_cast %114 : vector<2x1x8xf32> to vector<2x8xf32>
    %116 = vector.extract_strided_slice %77 {offsets = [0, 19, 0], sizes = [2, 1, 8], strides = [1, 1, 1]} : vector<2x32x8xf32> to vector<2x1x8xf32>
    %117 = vector.shape_cast %116 : vector<2x1x8xf32> to vector<2x8xf32>
    %118 = vector.extract_strided_slice %77 {offsets = [0, 20, 0], sizes = [2, 1, 8], strides = [1, 1, 1]} : vector<2x32x8xf32> to vector<2x1x8xf32>
    %119 = vector.shape_cast %118 : vector<2x1x8xf32> to vector<2x8xf32>
    %120 = vector.extract_strided_slice %77 {offsets = [0, 21, 0], sizes = [2, 1, 8], strides = [1, 1, 1]} : vector<2x32x8xf32> to vector<2x1x8xf32>
    %121 = vector.shape_cast %120 : vector<2x1x8xf32> to vector<2x8xf32>
    %122 = vector.extract_strided_slice %77 {offsets = [0, 22, 0], sizes = [2, 1, 8], strides = [1, 1, 1]} : vector<2x32x8xf32> to vector<2x1x8xf32>
    %123 = vector.shape_cast %122 : vector<2x1x8xf32> to vector<2x8xf32>
    %124 = vector.extract_strided_slice %77 {offsets = [0, 23, 0], sizes = [2, 1, 8], strides = [1, 1, 1]} : vector<2x32x8xf32> to vector<2x1x8xf32>
    %125 = vector.shape_cast %124 : vector<2x1x8xf32> to vector<2x8xf32>
    %126 = vector.extract_strided_slice %77 {offsets = [0, 24, 0], sizes = [2, 1, 8], strides = [1, 1, 1]} : vector<2x32x8xf32> to vector<2x1x8xf32>
    %127 = vector.shape_cast %126 : vector<2x1x8xf32> to vector<2x8xf32>
    %128 = vector.extract_strided_slice %77 {offsets = [0, 25, 0], sizes = [2, 1, 8], strides = [1, 1, 1]} : vector<2x32x8xf32> to vector<2x1x8xf32>
    %129 = vector.shape_cast %128 : vector<2x1x8xf32> to vector<2x8xf32>
    %130 = vector.extract_strided_slice %77 {offsets = [0, 26, 0], sizes = [2, 1, 8], strides = [1, 1, 1]} : vector<2x32x8xf32> to vector<2x1x8xf32>
    %131 = vector.shape_cast %130 : vector<2x1x8xf32> to vector<2x8xf32>
    %132 = vector.extract_strided_slice %77 {offsets = [0, 27, 0], sizes = [2, 1, 8], strides = [1, 1, 1]} : vector<2x32x8xf32> to vector<2x1x8xf32>
    %133 = vector.shape_cast %132 : vector<2x1x8xf32> to vector<2x8xf32>
    %134 = vector.extract_strided_slice %77 {offsets = [0, 28, 0], sizes = [2, 1, 8], strides = [1, 1, 1]} : vector<2x32x8xf32> to vector<2x1x8xf32>
    %135 = vector.shape_cast %134 : vector<2x1x8xf32> to vector<2x8xf32>
    %136 = vector.extract_strided_slice %77 {offsets = [0, 29, 0], sizes = [2, 1, 8], strides = [1, 1, 1]} : vector<2x32x8xf32> to vector<2x1x8xf32>
    %137 = vector.shape_cast %136 : vector<2x1x8xf32> to vector<2x8xf32>
    %138 = vector.extract_strided_slice %77 {offsets = [0, 30, 0], sizes = [2, 1, 8], strides = [1, 1, 1]} : vector<2x32x8xf32> to vector<2x1x8xf32>
    %139 = vector.shape_cast %138 : vector<2x1x8xf32> to vector<2x8xf32>
    %140 = vector.extract_strided_slice %77 {offsets = [0, 31, 0], sizes = [2, 1, 8], strides = [1, 1, 1]} : vector<2x32x8xf32> to vector<2x1x8xf32>
    %141 = vector.shape_cast %140 : vector<2x1x8xf32> to vector<2x8xf32>
    %142 = tpu.concatenate %79, %81, %83, %85, %87, %89, %91, %93, %95, %97, %99, %101, %103, %105, %107, %109 in 1 : vector<2x8xf32>, vector<2x8xf32>, vector<2x8xf32>, vector<2x8xf32>, vector<2x8xf32>, vector<2x8xf32>, vector<2x8xf32>, vector<2x8xf32>, vector<2x8xf32>, vector<2x8xf32>, vector<2x8xf32>, vector<2x8xf32>, vector<2x8xf32>, vector<2x8xf32>, vector<2x8xf32>, vector<2x8xf32> -> vector<2x128xf32>
    %143 = tpu.concatenate %111, %113, %115, %117, %119, %121, %123, %125, %127, %129, %131, %133, %135, %137, %139, %141 in 1 : vector<2x8xf32>, vector<2x8xf32>, vector<2x8xf32>, vector<2x8xf32>, vector<2x8xf32>, vector<2x8xf32>, vector<2x8xf32>, vector<2x8xf32>, vector<2x8xf32>, vector<2x8xf32>, vector<2x8xf32>, vector<2x8xf32>, vector<2x8xf32>, vector<2x8xf32>, vector<2x8xf32>, vector<2x8xf32> -> vector<2x128xf32>
    %144 = tpu.concatenate %142, %143 in 1 : vector<2x128xf32>, vector<2x128xf32> -> vector<2x256xf32>
    %c2 = arith.constant 2 : index
    %c0_6 = arith.constant 0 : index
    %145 = vector.load %arg2[%c2, %c0_6] : memref<4x256xf32, #tpu.memory_space<vmem>>, vector<2x256xf32>
    tpu.vector_store %arg2[%c2, %c0_6], %144 {strides = array<i32>} : memref<4x256xf32, #tpu.memory_space<vmem>>, vector<2x256xf32>,
    return
  }
  func.func @transform_0(%arg0: i32) -> (i32, i32, i32) {
    %c0_i32 = arith.constant 0 : i32
    %c0_i32_0 = arith.constant 0 : i32
    %c0_i32_1 = arith.constant 0 : i32
    return %c0_i32, %arg0, %c0_i32_0 : i32, i32, i32
  }
  func.func @transform_1(%arg0: i32) -> (i32, i32) {
    %c0_i32 = arith.constant 0 : i32
    %c0_i32_0 = arith.constant 0 : i32
    return %arg0, %c0_i32 : i32, i32
  }
}

</mosaic_0001>

<bundles_post_ra>
// kernel: tpu_custom_call.1
= control target key start
LH: loop header
LB: loop body
LE: loop exit
PB: predicated region body
PF: predicated region fallthrough
CT: control target
= control target key end

     0   :  { %6 = vsyncpa [#allocation3], 0  ;;  %s1171_s0 = inlined_call_operand.hbm [shape: f32[4,16,16], index: 0, kind: input, shape index: {}]   ;;  %s1172_s1 = inlined_call_operand.hbm [shape: f32[4,256], index: 1, kind: output, shape index: {}]  }
   0x1   :  { %7 = vsyncpa [#allocation4], 0  ;;  %s12_s8 = sshll.u32 %s1171_s0, 4  ;;  %s779_s9 = smov [#allocation2]   ;;  %s13_s8 = int_to_ptr.hbm [resolvable:$true] %s12_s8 }
   0x2   :  { %s14_s10 = sshll.u32 %s779_s9, 4  ;;  %s780_s11 = smov 128   ;;  %s15_s10 = int_to_ptr.vmem [resolvable:$true] %s14_s10 }
   0x3   :  { %s781_s12 = smov 8  }
   0x4   :  { %20 = dma.hbm_to_vmem [thread:$0]  %s13_s8, 1024, %s15_s10, [#allocation3], %s780_s11, %s780_s11, %s781_s12  }
   0x5   :  { %775 = dma.done.wait [#allocation3], 1024  }
   0x6   :  { %776 = vsyncadd [#allocation3], 4294966272  ;;  %v25_v0 = vld [vmem:[#allocation2] sm:$0xff]  ;;  %v26_v1 = vld [vmem:[#allocation2 + $0x10] sm:$0xff]  ;;  %vm128_vm0 = vcmask 1041409   ;;  %s782_s0 = smov 56  }
   0x7   :  { %29 = vxpose.xlu0.b32.start [1/4] (short) (narrow) %v25_v0, 16  ;;  %v27_v2 = vld [vmem:[#allocation2 + $0x20] sm:$0xff]  ;;  %v28_v3 = vld [vmem:[#allocation2 + $0x30] sm:$0xff]  ;;  %v366_v6 = vld [vmem:[#allocation2 + $0x8] sm:$0xff]  ;;  %s783_s13 = smov 80   ;;  %s784_s14 = smov 104  }
   0x8   :  { %v367_v7 = vld [vmem:[#allocation2 + $0x18] sm:$0xff]  ;;  %v368_v8 = vld [vmem:[#allocation2 + $0x28] sm:$0xff]  ;;  %s785_s15 = smov 40   ;;  %s786_s16 = smov 48   ;;  %vm220_vm1 = vcmask 64512   ;;  %vm222_vm2 = vcmask 130048  }
   0x9   :  { %v369_v9 = vld [vmem:[#allocation2 + $0x38] sm:$0xff]  ;;  %s787_s17 = smov 16   ;;  %s788_s18 = smov 64   ;;  %vm224_vm3 = vcmask 195584   ;;  %vm226_vm4 = vcmask 261120   ;;  %vm228_vm5 = vcmask 326656  }
   0xa   :  { %s789_s19 = smov 24   ;;  %s790_s20 = smov 88   ;;  %vm230_vm6 = vcmask 392192   ;;  %vm232_vm7 = vcmask 457728   ;;  %vm234_vm8 = vcmask 523264   ;;  %vm236_vm9 = vcmask 588800  }
   0xb   :  { %s791_s21 = smov 32   ;;  %s792_s22 = smov 112   ;;  %vm238_vm10 = vcmask 654336   ;;  %vm240_vm11 = vcmask 719872   ;;  %vm242_vm12 = vcmask 785408   ;;  %vm244_vm13 = vcmask 850944  }
   0xc   :  { %s793_s23 = smov 72   ;;  %s794_s24 = smov 96   ;;  %vm246_vm14 = vcmask 916480   ;;  %vm248_vm15 = vcmask 982016  }
   0xd   :  { %s795_s25 = smov 120   ;;  %s796_s26 = smov [#allocation5]  }
   0xe   :  { %s696_s27 = sshll.u32 %s796_s26, 4  ;;  %s698_s30 = sshll.u32 %s1172_s1, 4  ;;  %s697_s27 = int_to_ptr.vmem [resolvable:$true] %s696_s27  ;;  %s699_s30 = int_to_ptr.hbm [resolvable:$true] %s698_s30 }
   0xf   :  { %30 = vxpose.xlu0.b32.cont [2/4] (short) (narrow) %v26_v1, 16 }
  0x17   :  { %31 = vxpose.xlu0.b32.cont [3/4] (short) (narrow) %v27_v2, 16 }
  0x1f   :  { %32 = vxpose.xlu0.b32.end [4/4] (short) (narrow) %v28_v3, 16 }
  0xab   :  { %v45_v4 = vpop.trf.xlu0 }
  0xac   :  { %61 = vxpose.xlu1.b32.start.end [1/1] (short) (narrow) %v45_v4, 32 }
  0xb3   :  { %v46_v5 = vpop.trf.xlu0 }
  0xcc   :  { %93 = vxpose.xlu1.b32.start.end [1/1] (short) (narrow) %v46_v5, 32 }
  0xec   :  { %370 = vxpose.xlu1.b32.start [1/4] (short) (narrow) %v366_v6, 16 }
  0xf4   :  { %371 = vxpose.xlu1.b32.cont [2/4] (short) (narrow) %v367_v7, 16 }
  0xfc   :  { %372 = vxpose.xlu1.b32.cont [3/4] (short) (narrow) %v368_v8, 16 }
 0x104   :  { %373 = vxpose.xlu1.b32.end [4/4] (short) (narrow) %v369_v9, 16 }
 0x150   :  { %v77_v10 = vpop.trf.xlu1 }
 0x151   :  { %v166_v14 = vrot.slane %v77_v10, 7  ;;  %v154_v15 = vrot.slane %v77_v10, 5  ;;  %v131_v16 = vrot.slane %v77_v10, 1  ;;  %v136_v18 = vrot.slane %v77_v10, 2 }
 0x152   :  { %v142_v19 = vrot.slane %v77_v10, 3  ;;  %v148_v20 = vrot.slane %v77_v10, 4  ;;  %v160_v21 = vrot.slane %v77_v10, 6 }
 0x158   :  { %v78_v11 = vpop.trf.xlu1 }
 0x159   :  { %v179_v37 = vrot.slane %v78_v11, 1  ;;  %v184_v38 = vrot.slane %v78_v11, 2  ;;  %v190_v39 = vrot.slane %v78_v11, 3  ;;  %v196_v41 = vrot.slane %v78_v11, 4 }
 0x15a   :  { %v202_v42 = vrot.slane %v78_v11, 5  ;;  %v208_v43 = vrot.slane %v78_v11, 6  ;;  %v214_v44 = vrot.slane %v78_v11, 7 }
 0x160   :  { %v811_v12 = vpop.trf.xlu1 }
 0x161   :  { %v284_v60 = vrot.slane %v811_v12, 6  ;;  %v255_v61 = vrot.slane %v811_v12, 1  ;;  %v260_v62 = vrot.slane %v811_v12, 2  ;;  %v266_v0 = vrot.slane %v811_v12, 3 }
 0x162   :  { %v272_v1 = vrot.slane %v811_v12, 4  ;;  %v278_v2 = vrot.slane %v811_v12, 5  ;;  %v290_v3 = vrot.slane %v811_v12, 7 }
 0x168   :  { %v813_v13 = vpop.trf.xlu1 }
 0x170   :  { %v109_v17 = vpop.trf.xlu1 }
 0x171   :  { %v167_v22 = vrot.slane %v109_v17, 6  ;;  %v155_v23 = vrot.slane %v109_v17, 4  ;;  %v816_v24 = vsel %vm128_vm0, %v109_v17, %v131_v16  ;;  %v137_v25 = vrot.slane %v109_v17, 1 }
 0x172   :  { %v143_v26 = vrot.slane %v109_v17, 2  ;;  %v149_v27 = vrot.slane %v109_v17, 3  ;;  %v161_v28 = vrot.slane %v109_v17, 5  ;;  %v127_v29 = vrot.slane %v109_v17, 7 }
 0x173   :  { %v168_v30 = vsel %vm128_vm0, %v167_v22, %v166_v14  ;;  %v820_v31 = vsel %vm128_vm0, %v155_v23, %v154_v15  ;;  %v823_v32 = vsel %vm128_vm0, %v137_v25, %v136_v18  ;;  %v314_v23 = vrot.slane %v813_v13, 3 }
 0x174   :  { %169 = vrot.lane.b32.xlu1 %v168_v30, %s782_s0  ;;  %v827_v33 = vsel %vm128_vm0, %v143_v26, %v142_v19  ;;  %v830_v34 = vsel %vm128_vm0, %v149_v27, %v148_v20  ;;  %v833_v35 = vsel %vm128_vm0, %v161_v28, %v160_v21  ;;  %v836_v36 = vsel %vm128_vm0, %v127_v29, %v77_v10 }
 0x175   :  { %v308_v21 = vrot.slane %v813_v13, 2  ;;  %v332_v25 = vrot.slane %v813_v13, 6  ;;  %v303_v26 = vrot.slane %v813_v13, 1  ;;  %v320_v27 = vrot.slane %v813_v13, 4 }
 0x178   :  { %v110_v40 = vpop.trf.xlu1 }
 0x179   :  { %v174_v45 = vrot.slane %v110_v40, 7  ;;  %v839_v46 = vsel %vm128_vm0, %v110_v40, %v179_v37  ;;  %v185_v47 = vrot.slane %v110_v40, 1  ;;  %v191_v48 = vrot.slane %v110_v40, 2 }
 0x17a   :  { %v197_v49 = vrot.slane %v110_v40, 3  ;;  %v203_v50 = vrot.slane %v110_v40, 4  ;;  %v209_v51 = vrot.slane %v110_v40, 5  ;;  %v215_v52 = vrot.slane %v110_v40, 6 }
 0x17b   :  { %v842_v53 = vsel %vm128_vm0, %v174_v45, %v78_v11  ;;  %v845_v54 = vsel %vm128_vm0, %v185_v47, %v184_v38  ;;  %v848_v55 = vsel %vm128_vm0, %v191_v48, %v190_v39  ;;  %v338_v37 = vrot.slane %v813_v13, 7 }
 0x17c   :  { %v851_v56 = vsel %vm128_vm0, %v197_v49, %v196_v41  ;;  %v854_v57 = vsel %vm128_vm0, %v203_v50, %v202_v42  ;;  %v857_v58 = vsel %vm128_vm0, %v209_v51, %v208_v43  ;;  %v860_v59 = vsel %vm128_vm0, %v215_v52, %v214_v44 }
 0x17d   :  { %v326_v50 = vrot.slane %v813_v13, 5 }
 0x180   :  { %v111_v63 = vpop.trf.xlu1 }
 0x181   :  { %v285_v4 = vrot.slane %v111_v63, 5  ;;  %v870_v5 = vsel %vm128_vm0, %v111_v63, %v255_v61  ;;  %v261_v6 = vrot.slane %v111_v63, 1  ;;  %v267_v7 = vrot.slane %v111_v63, 2 }
 0x182   :  { %v273_v8 = vrot.slane %v111_v63, 3  ;;  %v279_v9 = vrot.slane %v111_v63, 4  ;;  %v291_v10 = vrot.slane %v111_v63, 6  ;;  %v252_v11 = vrot.slane %v111_v63, 7 }
 0x183   :  { %v286_v14 = vsel %vm128_vm0, %v285_v4, %v284_v60  ;;  %v874_v15 = vsel %vm128_vm0, %v261_v6, %v260_v62  ;;  %v877_v16 = vsel %vm128_vm0, %v267_v7, %v266_v0 }
 0x184   :  { %v880_v17 = vsel %vm128_vm0, %v273_v8, %v272_v1  ;;  %v883_v18 = vsel %vm128_vm0, %v279_v9, %v278_v2  ;;  %v886_v19 = vsel %vm128_vm0, %v291_v10, %v290_v3  ;;  %v890_v20 = vsel %vm128_vm0, %v252_v11, %v811_v12 }
 0x188   :  { %v112_v22 = vpop.trf.xlu1 }
 0x189   :  { %v309_v28 = vrot.slane %v112_v22, 1  ;;  %v298_v29 = vrot.slane %v112_v22, 7  ;;  %v315_v30 = vrot.slane %v112_v22, 2  ;;  %v333_v38 = vrot.slane %v112_v22, 5 }
 0x18a   :  { %v899_v12 = vsel %vm128_vm0, %v112_v22, %v303_v26  ;;  %v321_v39 = vrot.slane %v112_v22, 3  ;;  %v339_v40 = vrot.slane %v112_v22, 6  ;;  %v327_v48 = vrot.slane %v112_v22, 4 }
 0x18b   :  { %v310_v41 = vsel %vm128_vm0, %v309_v28, %v308_v21  ;;  %v299_v42 = vsel %vm128_vm0, %v298_v29, %v813_v13  ;;  %v316_v43 = vsel %vm128_vm0, %v315_v30, %v314_v23  ;;  %v334_v44 = vsel %vm128_vm0, %v333_v38, %v332_v25 }
 0x18c   :  { %311 = vrot.lane.b32.xlu1 %v310_v41, %s783_s13  ;;  %v908_v45 = vsel %vm128_vm0, %v321_v39, %v320_v27  ;;  %v911_v47 = vsel %vm128_vm0, %v339_v40, %v338_v37  ;;  %v328_v51 = vsel %vm128_vm0, %v327_v48, %v326_v50 }
 0x190   :  { %v386_v49 = vpop.trf.xlu1 }
 0x191   :  { %402 = vxpose.xlu0.b32.start.end [1/1] (short) (narrow) %v386_v49, 32 }
 0x194   :  { %329 = vrot.lane.b32.xlu1 %v328_v51, %s784_s14 }
 0x198   :  { %v387_v52 = vpop.trf.xlu1 }
 0x199   :  { %434 = vxpose.xlu2.b32.start.end [1/1] (short) (narrow) %v387_v52, 32 }
 0x217   :  { %157 = vrot.lane.b32.xlu0 %v820_v31, %s785_s15 }
 0x21a   :  { %133 = vrot.lane.b32.xlu2 %v816_v24, %s781_s12 }
 0x21f   :  { %287 = vrot.lane.b32.xlu0 %v286_v14, %s786_s16 }
 0x222   :  { %139 = vrot.lane.b32.xlu2 %v823_v32, %s787_s17 }
 0x227   :  { %300 = vrot.lane.b32.xlu0 %v299_v42, %s788_s18 }
 0x22a   :  { %145 = vrot.lane.b32.xlu2 %v827_v33, %s789_s19 }
 0x22f   :  { %317 = vrot.lane.b32.xlu0 %v316_v43, %s790_s20 }
 0x232   :  { %151 = vrot.lane.b32.xlu2 %v830_v34, %s791_s21  ;;  %v450_v13 = vpop.trf.xlu2 }
 0x233   :  { %v483_v24 = vrot.slane %v450_v13, 2  ;;  %v468_v32 = vrot.slane %v450_v13, 7  ;;  %v477_v62 = vrot.slane %v450_v13, 1  ;;  %v489_v3 = vrot.slane %v450_v13, 3 }
 0x234   :  { %v501_v4 = vrot.slane %v450_v13, 5  ;;  %v495_v14 = vrot.slane %v450_v13, 4  ;;  %v507_v26 = vrot.slane %v450_v13, 6 }
 0x235   :  { %v418_v31 = vpop.trf.xlu0 }
 0x236   :  { %v482_v60 = vrot.slane %v418_v31, 3  ;;  %v476_v61 = vrot.slane %v418_v31, 2  ;;  %v471_v33 = vrot.slane %v418_v31, 1  ;;  %v933_v0 = vsel %vm128_vm0, %v468_v32, %v418_v31 }
 0x237   :  { %335 = vrot.lane.b32.xlu0 %v334_v44, %s792_s22  ;;  %v500_v1 = vrot.slane %v418_v31, 6  ;;  %v488_v2 = vrot.slane %v418_v31, 4  ;;  %v494_v11 = vrot.slane %v418_v31, 5  ;;  %v506_v25 = vrot.slane %v418_v31, 7 }
 0x238   :  { %v484_v63 = vsel %vm128_vm0, %v483_v24, %v482_v60  ;;  %v936_v34 = vsel %vm128_vm0, %v477_v62, %v476_v61  ;;  %v472_v6 = vsel %vm128_vm0, %v450_v13, %v471_v33 }
 0x239   :  { %485 = vrot.lane.b32.xlu1 %v484_v63, %s789_s19  ;;  %v942_v7 = vsel %vm128_vm0, %v501_v4, %v500_v1  ;;  %v490_v9 = vsel %vm128_vm0, %v489_v3, %v488_v2  ;;  %v496_v29 = vsel %vm128_vm0, %v495_v14, %v494_v11  ;;  %v508_v38 = vsel %vm128_vm0, %v507_v26, %v506_v25 }
 0x23a   :  { %163 = vrot.lane.b32.xlu2 %v833_v35, %s786_s16  ;;  %v947_v10 = vpop.trf.xlu2 }
 0x23b   :  { %v543_v22 = vrot.slane %v947_v10, 4  ;;  %v555_v28 = vrot.slane %v947_v10, 6  ;;  %v514_v43 = vrot.slane %v947_v10, 7  ;;  %v525_v51 = vrot.slane %v947_v10, 1 }
 0x23d   :  { %v944_v8 = vpop.trf.xlu0 }
 0x23e   :  { %v519_v35 = vrot.slane %v944_v8, 1  ;;  %v542_v21 = vrot.slane %v944_v8, 5  ;;  %v554_v23 = vrot.slane %v944_v8, 7  ;;  %v524_v50 = vrot.slane %v944_v8, 2 }
 0x23f   :  { %473 = vrot.lane.b32.xlu0 %v472_v6, %s781_s12  ;;  %v515_v13 = vsel %vm128_vm0, %v514_v43, %v944_v8  ;;  %v530_v43 = vrot.slane %v944_v8, 3 }
 0x240   :  { %v959_v27 = vsel %vm128_vm0, %v947_v10, %v519_v35  ;;  %v964_v30 = vsel %vm128_vm0, %v543_v22, %v542_v21  ;;  %v967_v37 = vsel %vm128_vm0, %v555_v28, %v554_v23  ;;  %v526_v31 = vsel %vm128_vm0, %v525_v51, %v524_v50 }
 0x241   :  { %491 = vrot.lane.b32.xlu1 %v490_v9, %s791_s21  ;;  %v536_v50 = vrot.slane %v944_v8, 4  ;;  %v537_v51 = vrot.slane %v947_v10, 3 }
 0x242   :  { %176 = vrot.lane.b32.xlu2 %v842_v53, %s788_s18  ;;  %v452_v53 = vpop.trf.xlu2 }
 0x243   :  { %v577_v40 = vrot.slane %v452_v53, 7  ;;  %v586_v42 = vrot.slane %v452_v53, 1  ;;  %v604_v52 = vrot.slane %v452_v53, 4  ;;  %v592_v62 = vrot.slane %v452_v53, 2 }
 0x244   :  { %v598_v35 = vrot.slane %v452_v53, 3  ;;  %v610_v22 = vrot.slane %v452_v53, 5  ;;  %v616_v28 = vrot.slane %v452_v53, 6 }
 0x245   :  { %v420_v39 = vpop.trf.xlu0 }
 0x246   :  { %v585_v41 = vrot.slane %v420_v39, 2  ;;  %v974_v44 = vsel %vm128_vm0, %v577_v40, %v420_v39  ;;  %v603_v49 = vrot.slane %v420_v39, 5  ;;  %v580_v32 = vrot.slane %v420_v39, 1 }
 0x247   :  { %497 = vrot.lane.b32.xlu0 %v496_v29, %s785_s15  ;;  %v591_v1 = vrot.slane %v420_v39, 3  ;;  %v609_v21 = vrot.slane %v420_v39, 6  ;;  %v615_v26 = vrot.slane %v420_v39, 7 }
 0x248   :  { %v977_v48 = vsel %vm128_vm0, %v586_v42, %v585_v41  ;;  %v986_v24 = vsel %vm128_vm0, %v604_v52, %v603_v49  ;;  %v581_v9 = vsel %vm128_vm0, %v452_v53, %v580_v32 }
 0x249   :  { %509 = vrot.lane.b32.xlu1 %v508_v38, %s782_s0  ;;  %v593_v14 = vsel %vm128_vm0, %v592_v62, %v591_v1  ;;  %v611_v25 = vsel %vm128_vm0, %v610_v22, %v609_v21 }
 0x24a   :  { %181 = vrot.lane.b32.xlu2 %v839_v46, %s793_s23  ;;  %v990_v60 = vpop.trf.xlu2 }
 0x24b   :  { %v623_v46 = vrot.slane %v990_v60, 7  ;;  %v640_v33 = vrot.slane %v990_v60, 2  ;;  %v652_v4 = vrot.slane %v990_v60, 4  ;;  %v646_v53 = vrot.slane %v990_v60, 3 }
 0x24c   :  { %v658_v32 = vrot.slane %v990_v60, 5  ;;  %v664_v62 = vrot.slane %v990_v60, 6 }
 0x24d   :  { %v992_v61 = vpop.trf.xlu0 }
 0x24e   :  { %v639_v63 = vrot.slane %v992_v61, 3  ;;  %v1002_v2 = vsel %vm128_vm0, %v623_v46, %v992_v61  ;;  %v651_v3 = vrot.slane %v992_v61, 5  ;;  %v628_v29 = vrot.slane %v992_v61, 1 }
 0x24f   :  { %516 = vrot.lane.b32.xlu0 %v515_v13, %s788_s18  ;;  %v633_v40 = vrot.slane %v992_v61, 2 }
 0x250   :  { %v1007_v6 = vsel %vm128_vm0, %v640_v33, %v639_v63  ;;  %v1011_v11 = vsel %vm128_vm0, %v652_v4, %v651_v3  ;;  %v629_v38 = vsel %vm128_vm0, %v990_v60, %v628_v29 }
 0x251   :  { %527 = vrot.lane.b32.xlu1 %v526_v31, %s783_s13  ;;  %v538_v31 = vsel %vm128_vm0, %v537_v51, %v536_v50 }
 0x252   :  { %187 = vrot.lane.b32.xlu2 %v845_v54, %s783_s13  ;;  %v597_v54 = vrot.slane %v420_v39, 4  ;;  %v634_v39 = vrot.slane %v990_v60, 1 }
 0x254   :  { %v599_v23 = vsel %vm128_vm0, %v598_v35, %v597_v54  ;;  %v635_v41 = vsel %vm128_vm0, %v634_v39, %v633_v40 }
 0x257   :  { %582 = vrot.lane.b32.xlu0 %v581_v9, %s781_s12 }
 0x259   :  { %594 = vrot.lane.b32.xlu1 %v593_v14, %s789_s19 }
 0x25a   :  { %193 = vrot.lane.b32.xlu2 %v848_v55, %s790_s20  ;;  %v617_v55 = vsel %vm128_vm0, %v616_v28, %v615_v26 }
 0x25f   :  { %600 = vrot.lane.b32.xlu0 %v599_v23, %s791_s21 }
 0x261   :  { %612 = vrot.lane.b32.xlu1 %v611_v25, %s786_s16 }
 0x262   :  { %199 = vrot.lane.b32.xlu2 %v851_v56, %s794_s24  ;;  %v645_v56 = vrot.slane %v992_v61, 4 }
 0x264   :  { %v647_v42 = vsel %vm128_vm0, %v646_v53, %v645_v56 }
 0x267   :  { %618 = vrot.lane.b32.xlu0 %v617_v55, %s782_s0 }
 0x269   :  { %630 = vrot.lane.b32.xlu1 %v629_v38, %s793_s23 }
 0x26a   :  { %205 = vrot.lane.b32.xlu2 %v854_v57, %s784_s14  ;;  %v531_v57 = vrot.slane %v947_v10, 2 }
 0x26c   :  { %v532_v13 = vsel %vm128_vm0, %v531_v57, %v530_v43 }
 0x26f   :  { %636 = vrot.lane.b32.xlu0 %v635_v41, %s783_s13 }
 0x271   :  { %648 = vrot.lane.b32.xlu1 %v647_v42, %s794_s24 }
 0x272   :  { %211 = vrot.lane.b32.xlu2 %v857_v58, %s792_s22  ;;  %v657_v58 = vrot.slane %v992_v61, 6 }
 0x274   :  { %v134_v49 = vpop.permute.xlu2 %133  ;;  %v659_v33 = vsel %vm128_vm0, %v658_v32, %v657_v58 }
 0x275   :  { %v221_v52 = vsel %vm220_vm1, %v836_v36, %v134_v49  ;;  %v663_v36 = vrot.slane %v992_v61, 7  ;;  %v549_v61 = vrot.slane %v947_v10, 5 }
 0x277   :  { %533 = vrot.lane.b32.xlu0 %v532_v13, %s790_s20  ;;  %v665_v1 = vsel %vm128_vm0, %v664_v62, %v663_v36 }
 0x279   :  { %539 = vrot.lane.b32.xlu1 %v538_v31, %s794_s24 }
 0x27a   :  { %217 = vrot.lane.b32.xlu2 %v860_v59, %s795_s25  ;;  %v548_v59 = vrot.slane %v944_v8, 6 }
 0x27c   :  { %v140_v46 = vpop.permute.xlu2 %139  ;;  %v550_v4 = vsel %vm128_vm0, %v549_v61, %v548_v59  ;;  %vm362_vm0 = vcmask 1043456  }
 0x27d   :  { %v223_v63 = vsel %vm222_vm2, %v221_v52, %v140_v46 }
 0x27f   :  { %660 = vrot.lane.b32.xlu0 %v659_v33, %s792_s22 }
 0x281   :  { %666 = vrot.lane.b32.xlu1 %v665_v1, %s795_s25 }
 0x282   :  { %257 = vrot.lane.b32.xlu2 %v870_v5, %s781_s12 }
 0x284   :  { %v146_v3 = vpop.permute.xlu2 %145 }
 0x285   :  { %v225_v60 = vsel %vm224_vm3, %v223_v63, %v146_v3 }
 0x287   :  { %551 = vrot.lane.b32.xlu0 %v550_v4, %s792_s22 }
 0x289   :  { %v158_v5 = vpop.permute.xlu0 %157 }
 0x28a   :  { %263 = vrot.lane.b32.xlu2 %v874_v15, %s787_s17  ;;  %v170_v15 = vpop.permute.xlu1 %169 }
 0x28c   :  { %v152_v9 = vpop.permute.xlu2 %151 }
 0x28d   :  { %v227_v14 = vsel %vm226_vm4, %v225_v60, %v152_v9 }
 0x28e   :  { %v229_v8 = vsel %vm228_vm5, %v227_v14, %v158_v5 }
 0x292   :  { %269 = vrot.lane.b32.xlu2 %v877_v16, %s789_s19  ;;  %v312_v41 = vpop.permute.xlu1 %311 }
 0x294   :  { %v164_v10 = vpop.permute.xlu2 %163 }
 0x295   :  { %v231_v54 = vsel %vm230_vm6, %v229_v8, %v164_v10 }
 0x296   :  { %v233_v21 = vsel %vm232_vm7, %v231_v54, %v170_v15 }
 0x29a   :  { %275 = vrot.lane.b32.xlu2 %v880_v17, %s791_s21 }
 0x29c   :  { %v177_v35 = vpop.permute.xlu2 %176 }
 0x29d   :  { %v235_v22 = vsel %vm234_vm8, %v233_v21, %v177_v35 }
 0x2a2   :  { %281 = vrot.lane.b32.xlu2 %v883_v18, %s785_s15 }
 0x2a4   :  { %v182_v16 = vpop.permute.xlu2 %181 }
 0x2a5   :  { %v237_v23 = vsel %vm236_vm9, %v235_v22, %v182_v16 }
 0x2aa   :  { %293 = vrot.lane.b32.xlu2 %v886_v19, %s782_s0 }
 0x2ac   :  { %v188_v25 = vpop.permute.xlu2 %187 }
 0x2ad   :  { %v239_v17 = vsel %vm238_vm10, %v237_v23, %v188_v25 }
 0x2b2   :  { %305 = vrot.lane.b32.xlu2 %v899_v12, %s793_s23 }
 0x2b4   :  { %v194_v26 = vpop.permute.xlu2 %193 }
 0x2b5   :  { %v241_v28 = vsel %vm240_vm11, %v239_v17, %v194_v26 }
 0x2ba   :  { %323 = vrot.lane.b32.xlu2 %v908_v45, %s794_s24 }
 0x2bc   :  { %v200_v18 = vpop.permute.xlu2 %199 }
 0x2bd   :  { %v243_v29 = vsel %vm242_vm12, %v241_v28, %v200_v18 }
 0x2c2   :  { %341 = vrot.lane.b32.xlu2 %v911_v47, %s795_s25 }
 0x2c4   :  { %v206_v19 = vpop.permute.xlu2 %205 }
 0x2c5   :  { %v245_v55 = vsel %vm244_vm13, %v243_v29, %v206_v19 }
 0x2ca   :  { %479 = vrot.lane.b32.xlu2 %v936_v34, %s787_s17  ;;  %v288_v34 = vpop.permute.xlu0 %287 }
 0x2cc   :  { %v212_v12 = vpop.permute.xlu2 %211 }
 0x2cd   :  { %v247_v38 = vsel %vm246_vm14, %v245_v55, %v212_v12 }
 0x2d2   :  { %503 = vrot.lane.b32.xlu2 %v942_v7, %s786_s16  ;;  %v301_v7 = vpop.permute.xlu0 %300 }
 0x2d4   :  { %v218_v45 = vpop.permute.xlu2 %217 }
 0x2d5   :  { %v249_v40 = vsel %vm248_vm15, %v247_v38, %v218_v45 }
 0x2da   :  { %521 = vrot.lane.b32.xlu2 %v959_v27, %s793_s23  ;;  %v318_v42 = vpop.permute.xlu0 %317 }
 0x2dc   :  { %v258_v47 = vpop.permute.xlu2 %257 }
 0x2e2   :  { %588 = vrot.lane.b32.xlu2 %v977_v48, %s787_s17  ;;  %v344_v48 = vsel %vm220_vm1, %v890_v20, %v258_v47  ;;  %v336_v50 = vpop.permute.xlu0 %335 }
 0x2e4   :  { %v264_v39 = vpop.permute.xlu2 %263 }
 0x2ea   :  { %606 = vrot.lane.b32.xlu2 %v986_v24, %s785_s15  ;;  %v345_v24 = vsel %vm222_vm2, %v344_v48, %v264_v39  ;;  %v474_v58 = vpop.permute.xlu0 %473 }
 0x2eb   :  { %v560_v28 = vsel %vm220_vm1, %v933_v0, %v474_v58 }
 0x2ec   :  { %v270_v56 = vpop.permute.xlu2 %269 }
 0x2ed   :  { %v346_v57 = vsel %vm224_vm3, %v345_v24, %v270_v56 }
 0x2f2   :  { %625 = vrot.lane.b32.xlu2 %v1002_v2, %s788_s18  ;;  %v330_v2 = vpop.permute.xlu1 %329  ;;  %v498_v33 = vpop.permute.xlu0 %497 }
 0x2f4   :  { %v276_v53 = vpop.permute.xlu2 %275 }
 0x2f5   :  { %v347_v49 = vsel %vm226_vm4, %v346_v57, %v276_v53 }
 0x2fa   :  { %642 = vrot.lane.b32.xlu2 %v1007_v6, %s790_s20  ;;  %v486_v20 = vpop.permute.xlu1 %485  ;;  %v517_v9 = vpop.permute.xlu0 %516 }
 0x2fc   :  { %v282_v27 = vpop.permute.xlu2 %281 }
 0x2fd   :  { %v348_v6 = vsel %vm228_vm5, %v347_v49, %v282_v27 }
 0x2fe   :  { %v349_v51 = vsel %vm230_vm6, %v348_v6, %v288_v34 }
 0x302   :  { %654 = vrot.lane.b32.xlu2 %v1011_v11, %s784_s14  ;;  %v583_v8 = vpop.permute.xlu0 %582 }
 0x303   :  { %v669_v23 = vsel %vm220_vm1, %v974_v44, %v583_v8 }
 0x304   :  { %v294_v43 = vpop.permute.xlu2 %293 }
 0x305   :  { %v350_v11 = vsel %vm232_vm7, %v349_v51, %v294_v43 }
 0x306   :  { %v351_v13 = vsel %vm234_vm8, %v350_v11, %v301_v7 }
 0x30a   :  { %545 = vrot.lane.b32.xlu2 %v964_v30, %s784_s14  ;;  %v492_v30 = vpop.permute.xlu1 %491  ;;  %v601_v15 = vpop.permute.xlu0 %600 }
 0x30c   :  { %v306_v52 = vpop.permute.xlu2 %305 }
 0x30d   :  { %v352_v31 = vsel %vm236_vm9, %v351_v13, %v306_v52 }
 0x30e   :  { %v353_v32 = vsel %vm238_vm10, %v352_v31, %v312_v41 }
 0x30f   :  { %v354_v36 = vsel %vm240_vm11, %v353_v32, %v318_v42 }
 0x312   :  { %557 = vrot.lane.b32.xlu2 %v967_v37, %s795_s25  ;;  %v510_v37 = vpop.permute.xlu1 %509  ;;  %v619_v22 = vpop.permute.xlu0 %618 }
 0x314   :  { %v324_v46 = vpop.permute.xlu2 %323 }
 0x315   :  { %v355_v62 = vsel %vm242_vm12, %v354_v36, %v324_v46 }
 0x316   :  { %v356_v63 = vsel %vm244_vm13, %v355_v62, %v330_v2 }
 0x317   :  { %v357_v59 = vsel %vm246_vm14, %v356_v63, %v336_v50 }
 0x31a   :  { %v528_v14 = vpop.permute.xlu1 %527  ;;  %v637_v18 = vpop.permute.xlu0 %636 }
 0x31c   :  { %v342_v1 = vpop.permute.xlu2 %341 }
 0x31d   :  { %v358_v61 = vsel %vm248_vm15, %v357_v59, %v342_v1 }
 0x31e   :  { %v361_v3 = vrot.slane %v358_v61, 4 }
 0x320   :  { %v363_v60 = vsel %vm362_vm0, %v249_v40, %v361_v3 }
 0x321   :  { %365 = vst [vmem:[#allocation5] sm:$0x33] %v363_v60 }
 0x322   :  { %v595_v54 = vpop.permute.xlu1 %594  ;;  %v534_v39 = vpop.permute.xlu0 %533 }
 0x324   :  { %v480_v4 = vpop.permute.xlu2 %479 }
 0x325   :  { %v561_v19 = vsel %vm222_vm2, %v560_v28, %v480_v4 }
 0x326   :  { %v562_v12 = vsel %vm224_vm3, %v561_v19, %v486_v20 }
 0x327   :  { %v563_v44 = vsel %vm226_vm4, %v562_v12, %v492_v30 }
 0x328   :  { %v564_v0 = vsel %vm228_vm5, %v563_v44, %v498_v33 }
 0x32a   :  { %v613_v21 = vpop.permute.xlu1 %612  ;;  %v661_v2 = vpop.permute.xlu0 %660 }
 0x32c   :  { %v504_v5 = vpop.permute.xlu2 %503 }
 0x32d   :  { %v565_v56 = vsel %vm230_vm6, %v564_v0, %v504_v5 }
 0x32e   :  { %v566_v53 = vsel %vm232_vm7, %v565_v56, %v510_v37 }
 0x32f   :  { %v567_v48 = vsel %vm234_vm8, %v566_v53, %v517_v9 }
 0x332   :  { %v631_v25 = vpop.permute.xlu1 %630  ;;  %v552_v32 = vpop.permute.xlu0 %551 }
 0x334   :  { %v522_v10 = vpop.permute.xlu2 %521 }
 0x335   :  { %v568_v43 = vsel %vm236_vm9, %v567_v48, %v522_v10 }
 0x336   :  { %v569_v49 = vsel %vm238_vm10, %v568_v43, %v528_v14 }
 0x337   :  { %v570_v11 = vsel %vm240_vm11, %v569_v49, %v534_v39 }
 0x33a   :  { %v649_v45 = vpop.permute.xlu1 %648 }
 0x33c   :  { %v589_v35 = vpop.permute.xlu2 %588 }
 0x33d   :  { %v670_v17 = vsel %vm222_vm2, %v669_v23, %v589_v35 }
 0x33e   :  { %v671_v29 = vsel %vm224_vm3, %v670_v17, %v595_v54 }
 0x33f   :  { %v672_v55 = vsel %vm226_vm4, %v671_v29, %v601_v15 }
 0x342   :  { %v540_v42 = vpop.permute.xlu1 %539 }
 0x343   :  { %v571_v13 = vsel %vm242_vm12, %v570_v11, %v540_v42 }
 0x344   :  { %v607_v16 = vpop.permute.xlu2 %606 }
 0x345   :  { %v673_v38 = vsel %vm228_vm5, %v672_v55, %v607_v16 }
 0x346   :  { %v674_v40 = vsel %vm230_vm6, %v673_v38, %v613_v21 }
 0x347   :  { %v675_v34 = vsel %vm232_vm7, %v674_v40, %v619_v22 }
 0x34a   :  { %v667_v20 = vpop.permute.xlu1 %666 }
 0x34c   :  { %v626_v26 = vpop.permute.xlu2 %625 }
 0x34d   :  { %v676_v7 = vsel %vm234_vm8, %v675_v34, %v626_v26 }
 0x34e   :  { %v677_v41 = vsel %vm236_vm9, %v676_v7, %v631_v25 }
 0x34f   :  { %v678_v24 = vsel %vm238_vm10, %v677_v41, %v637_v18 }
 0x354   :  { %v643_v47 = vpop.permute.xlu2 %642 }
 0x355   :  { %v679_v57 = vsel %vm240_vm11, %v678_v24, %v643_v47 }
 0x356   :  { %v680_v50 = vsel %vm242_vm12, %v679_v57, %v649_v45 }
 0x35c   :  { %v655_v27 = vpop.permute.xlu2 %654 }
 0x35d   :  { %v681_v6 = vsel %vm244_vm13, %v680_v50, %v655_v27 }
 0x35e   :  { %v682_v52 = vsel %vm246_vm14, %v681_v6, %v661_v2 }
 0x35f   :  { %v683_v31 = vsel %vm248_vm15, %v682_v52, %v667_v20 }
 0x360   :  { %v686_v46 = vrot.slane %v683_v31, 4 }
 0x364   :  { %v546_v51 = vpop.permute.xlu2 %545 }
 0x365   :  { %v572_v58 = vsel %vm244_vm13, %v571_v13, %v546_v51 }
 0x366   :  { %v573_v62 = vsel %vm246_vm14, %v572_v58, %v552_v32 }
 0x36c   :  { %v558_v36 = vpop.permute.xlu2 %557 }
 0x36d   :  { %v574_v30 = vsel %vm248_vm15, %v573_v62, %v558_v36 }
 0x36e   :  { %v687_v63 = vsel %vm362_vm0, %v574_v30, %v686_v46 }
 0x36f   :  { %v688_v33 = vrot.slane %v687_v63, 6 }
 0x371   :  { %690 = vst [vmem:[#allocation5] sm:$0xcc] %v688_v33 }
 0x372   :  { %701 = dma.vmem_to_hbm [thread:$0]  %s697_s27, 128, %s699_s30, [#allocation4]  }
 0x373   :  { %777 = dma.done.wait [#allocation4], 128  }
 0x374   :  { %778 = vsyncadd [#allocation4], 4294967168 }
 0x375   :  { %706 = vsyncpa [#allocation3], 1 }
 0x376   :  { %707 = vsyncpa [#allocation4], 1 }

</bundles_post_ra>
